<compile_context>
chip_gen: v7x
topology: tpu7x:2x2x1
jax: 0.10.0
libtpu: 0.0.40
codegen_flags: <defaults>
</compile_context>

<pallas_src>
import jax
import jax.numpy as jnp
from jax import lax
from jax.experimental import pallas as pl
from jax.experimental.pallas import tpu as pltpu

IN_F, HID_F, OUT_F = 2, 2, 1
LANE = 128                  # TPU lane width; 128 batch elements per row-block
PAIR = 2 * LANE             # 256 lanes: [x0, x1] interleaved for 128 elements
TARGET_ROWS = 1024          # <= 128K batch elements (~1.5 MB HBM) per grid step
MIN_PALLAS_BATCH = 1024     # below this, XLA fusion beats any kernel launch


def _round_up(n, m):
    return ((n + m - 1) // m) * m


def _mlp_kernel(scal_ref, m2_ref, x_ref, o_ref):
    """One batch tile of SimpleNN.

    scal_ref: SMEM f32[9] = [w1_00, w1_01, w1_10, w1_11, b1_0, b1_1,
                             w2_00, w2_01, b2_0]
    m2_ref:   VMEM f32[256, 128] with m2[2k, k] = w2_00, m2[2k+1, k] = w2_01
              (fc2 contraction fused with the even/odd lane de-interleave).
    x_ref:    VMEM f32[rpb, 256] -- 128 batch elements per row, features
              interleaved on lanes: [x0, x1, x0, x1, ...].
    o_ref:    VMEM f32[rpb, 128] -- one output per batch element, lane-dense.
    """
    w00 = scal_ref[0]
    w01 = scal_ref[1]
    w10 = scal_ref[2]
    w11 = scal_ref[3]
    b0 = scal_ref[4]
    b1 = scal_ref[5]
    c = scal_ref[8]

    x = x_ref[...]                               # (rpb, 256)
    x_nxt = pltpu.roll(x, PAIR - 1, axis=1)      # lane j <- lane j+1
    x_prv = pltpu.roll(x, 1, axis=1)             # lane j <- lane j-1

    lane = lax.broadcasted_iota(jnp.int32, x.shape, 1)
    is_even = (lane & 1) == 0

    # fc1 + ReLU on the VPU (exact f32):
    #   even lane 2k:    x = x0_k, x_nxt = x1_k  ->  h0_k
    #   odd  lane 2k+1:  x = x1_k, x_prv = x0_k  ->  h1_k
    pre = jnp.where(is_even,
                    w00 * x + w01 * x_nxt + b0,
                    w10 * x_prv + w11 * x + b1)
    h = jnp.maximum(pre, 0.0)

    # fc2 + de-interleave in one MXU matmul:
    #   out[r, k] = h[r, 2k] * w2_00 + h[r, 2k+1] * w2_01 + b2
    y = jnp.dot(h, m2_ref[...], preferred_element_type=jnp.float32)
    o_ref[...] = y + c


def pack_params(w1, b1, w2, b2):
    """Pack torch-layout (out, in) params ONCE at init time.

    Returns (scal, m2):
      scal: f32[9] = [w1_00, w1_01, w1_10, w1_11, b1_0, b1_1, w2_00, w2_01, b2]
      m2:   f32[256, 128] fc2-weights-with-de-interleave matrix:
            m2[2k, k] = w2[0, 0], m2[2k+1, k] = w2[0, 1], else 0.
    """
    w1 = w1.astype(jnp.float32)
    b1 = b1.astype(jnp.float32)
    w2 = w2.astype(jnp.float32)
    b2 = b2.astype(jnp.float32)
    scal = jnp.concatenate(
        [w1.reshape(-1), b1.reshape(-1), w2.reshape(-1), b2.reshape(-1)])
    rows = jnp.arange(PAIR)[:, None]
    cols = jnp.arange(LANE)[None, :]
    m2 = (jnp.where(rows == 2 * cols, w2[0, 0], 0.0) +
          jnp.where(rows == 2 * cols + 1, w2[0, 1], 0.0))
    return scal, m2.astype(jnp.float32)


def _forward_xla(x, scal):
    """Exact-f32 elementwise path: tiny-batch fallback and test reference."""
    x = x.astype(jnp.float32)
    x0, x1 = x[:, 0:1], x[:, 1:2]
    h0 = jnp.maximum(scal[0] * x0 + scal[1] * x1 + scal[4], 0.0)
    h1 = jnp.maximum(scal[2] * x0 + scal[3] * x1 + scal[5], 0.0)
    return scal[6] * h0 + scal[7] * h1 + scal[8]


def simple_nn_forward(x, packed, *, target_rows=TARGET_ROWS,
                      min_pallas_batch=MIN_PALLAS_BATCH):
    """x: (B, 2) float, packed = pack_params(...). Returns (B, 1) f32."""
    assert x.ndim == 2 and x.shape[1] == IN_F
    scal, m2 = packed
    B = x.shape[0]

    # Tiny batches: launch + pipeline overhead dominates ~10 flops/element;
    # let XLA fuse it into the surrounding graph (perf review item: gating).
    if B < min_pallas_batch:
        return _forward_xla(x, scal)

    x = x.astype(jnp.float32)
    Bp = _round_up(B, LANE)
    if Bp != B:
        # Ragged tail: pad only to the next 128-element boundary (<=127 rows),
        # never to a full multi-thousand-lane tile.
        x = jnp.pad(x, ((0, Bp - B), (0, 0)))

    # FREE row-major reshape (no transpose, no copy): each row = 128 batch
    # elements, features interleaved on lanes -> fully dense (8,128) tiles.
    rows = Bp // LANE
    x2d = x.reshape(rows, PAIR)

    if rows <= 8:
        rpb = rows                               # one small block (== full dim)
    else:
        # >= 2 grid steps so the "parallel" axis can shard across v7x's two
        # TensorCores, while each step still moves up to ~1.5 MB of HBM.
        rpb = min(target_rows, _round_up(pl.cdiv(rows, 2), 8))
    grid = (pl.cdiv(rows, rpb),)

    out2d = pl.pallas_call(
        _mlp_kernel,
        out_shape=jax.ShapeDtypeStruct((rows, LANE), jnp.float32),
        grid=grid,
        in_specs=[
            # 9 real scalars resident in SMEM for the whole kernel.
            pl.BlockSpec(memory_space=pltpu.MemorySpace.SMEM),
            # fc2/de-interleave matrix: constant block index -> fetched once.
            pl.BlockSpec((PAIR, LANE), lambda i: (0, 0)),
            # Batch tile: lane- and sublane-dense.
            pl.BlockSpec((rpb, PAIR), lambda i: (i, 0)),
        ],
        # Lane-dense (multiple-of-128) output tile -> unmasked stores.
        out_specs=pl.BlockSpec((rpb, LANE), lambda i: (i, 0)),
        compiler_params=pltpu.CompilerParams(
            dimension_semantics=("parallel",)),
    )(scal, m2, x2d)

    # Free reshape back to (Bp, 1); prefix-slice off the 128-boundary padding.
    return out2d.reshape(Bp, OUT_F)[:B]


def _init_params(key):
    # Mimic torch.nn.Linear default init: U(-1/sqrt(fan_in), 1/sqrt(fan_in)).
    k1, k2, k3, k4 = jax.random.split(key, 4)
    bound1 = 1.0 / jnp.sqrt(IN_F)
    bound2 = 1.0 / jnp.sqrt(HID_F)
    w1 = jax.random.uniform(k1, (HID_F, IN_F), jnp.float32, -bound1, bound1)
    b1 = jax.random.uniform(k2, (HID_F,), jnp.float32, -bound1, bound1)
    w2 = jax.random.uniform(k3, (OUT_F, HID_F), jnp.float32, -bound2, bound2)
    b2 = jax.random.uniform(k4, (OUT_F,), jnp.float32, -bound2, bound2)
    return w1, b1, w2, b2


if __name__ == "__main__":
    key = jax.random.PRNGKey(0)
    kp, k1, k2, k3 = jax.random.split(key, 4)
    w1, b1, w2, b2 = _init_params(kp)
    packed = pack_params(w1, b1, w2, b2)     # packed ONCE at init time
    scal, _ = packed

    # Tolerance note: fc2 + the lane de-interleave run on the MXU; depending
    # on the TPU generation / compiler the f32 matmul may use reduced-precision
    # bf16 passes, so allow a small tolerance.  Layout/indexing bugs produce
    # O(1) errors and are still caught.
    TOL = dict(atol=2e-2, rtol=2e-2)

    # 1) Small batch forced through the Pallas kernel (pads 8 -> 128,
    #    one (1, 256) tile, single grid step).
    x8 = jax.random.normal(k1, (8, IN_F), jnp.float32)
    out8 = jax.block_until_ready(
        simple_nn_forward(x8, packed, min_pallas_batch=1))
    ref8 = _forward_xla(x8, scal)
    assert out8.shape == (8, OUT_F)
    assert jnp.allclose(out8, ref8, **TOL)

    # 2) Dense batch of 1024 (8 fully dense rows, single grid step).
    x1k = jax.random.normal(k2, (1024, IN_F), jnp.float32)
    out1k = jax.block_until_ready(simple_nn_forward(x1k, packed))
    ref1k = _forward_xla(x1k, scal)
    assert out1k.shape == (1024, OUT_F)
    assert jnp.allclose(out1k, ref1k, **TOL)

    # 3) Ragged batch of 2500 (pads to 2560 -> 20 rows, 2 "parallel" grid
    #    steps with a partial last block).
    x2k5 = jax.random.normal(k3, (2500, IN_F), jnp.float32)
    out2k5 = jax.block_until_ready(simple_nn_forward(x2k5, packed))
    ref2k5 = _forward_xla(x2k5, scal)
    assert out2k5.shape == (2500, OUT_F)
    assert jnp.allclose(out2k5, ref2k5, **TOL)

    # 4) Tiny-batch gated path (no kernel launch; exact f32 XLA fusion).
    out_small = jax.block_until_ready(simple_nn_forward(x8, packed))
    assert jnp.allclose(out_small, ref8, atol=1e-6, rtol=1e-6)

    print("KERNEL_OK")
</pallas_src>

<mosaic_0001>
module attributes {stable_mosaic.version = 11 : i64} {
  func.func @_mlp_kernel(%arg0: i32, %arg1: memref<9xf32, #tpu.memory_space<smem>>, %arg2: memref<256x128xf32, #tpu.memory_space<vmem>>, %arg3: memref<1x256xf32, #tpu.memory_space<vmem>>, %arg4: memref<1x128xf32, #tpu.memory_space<vmem>>) attributes {dimension_semantics = [#tpu.dimension_semantics<parallel>], iteration_bounds = array<i64: 1>, scalar_prefetch = 0 : i64, scratch_operands = 0 : i64, tpu.core_type = #tpu.core_type<tc>, window_params = [{transform_indices = @transform_0, window_bounds = array<i64: 9>}, {pipeline_mode = #tpu.pipeline_mode<synchronous>, transform_indices = @transform_1, window_bounds = array<i64: 256, 128>}, {transform_indices = @transform_2, window_bounds = array<i64: 1, 256>}, {transform_indices = @transform_3, window_bounds = array<i64: 1, 128>}]} {
    %c0 = arith.constant 0 : index
    %0 = memref.load %arg1[%c0] : memref<9xf32, #tpu.memory_space<smem>>
    %c1 = arith.constant 1 : index
    %1 = memref.load %arg1[%c1] : memref<9xf32, #tpu.memory_space<smem>>
    %c2 = arith.constant 2 : index
    %2 = memref.load %arg1[%c2] : memref<9xf32, #tpu.memory_space<smem>>
    %c3 = arith.constant 3 : index
    %3 = memref.load %arg1[%c3] : memref<9xf32, #tpu.memory_space<smem>>
    %c4 = arith.constant 4 : index
    %4 = memref.load %arg1[%c4] : memref<9xf32, #tpu.memory_space<smem>>
    %c5 = arith.constant 5 : index
    %5 = memref.load %arg1[%c5] : memref<9xf32, #tpu.memory_space<smem>>
    %c8 = arith.constant 8 : index
    %6 = memref.load %arg1[%c8] : memref<9xf32, #tpu.memory_space<smem>>
    %c0_0 = arith.constant 0 : index
    %c0_1 = arith.constant 0 : index
    %7 = vector.load %arg3[%c0_0, %c0_1] : memref<1x256xf32, #tpu.memory_space<vmem>>, vector<1x256xf32>
    %c255_i32 = arith.constant 255 : i32
    %8 = tpu.dynamic_rotate %7 by %c255_i32 dim 1 : vector<1x256xf32>, i32 -> vector<1x256xf32>
    %c1_i32 = arith.constant 1 : i32
    %9 = tpu.dynamic_rotate %7 by %c1_i32 dim 1 : vector<1x256xf32>, i32 -> vector<1x256xf32>
    %10 = tpu.iota {dimensions = array<i32: 1>} : vector<1x256xi32>
    %c1_i32_2 = arith.constant 1 : i32
    %11 = vector.broadcast %c1_i32_2 : i32 to vector<1x256xi32>
    %12 = arith.andi %10, %11 : vector<1x256xi32>
    %c0_i32 = arith.constant 0 : i32
    %13 = vector.broadcast %c0_i32 : i32 to vector<1x256xi32>
    %14 = arith.cmpi eq, %12, %13 : vector<1x256xi32>
    %15 = vector.broadcast %0 : f32 to vector<1x256xf32>
    %16 = arith.mulf %15, %7 : vector<1x256xf32>
    %17 = vector.broadcast %1 : f32 to vector<1x256xf32>
    %18 = arith.mulf %17, %8 : vector<1x256xf32>
    %19 = arith.addf %16, %18 : vector<1x256xf32>
    %20 = vector.broadcast %4 : f32 to vector<1x256xf32>
    %21 = arith.addf %19, %20 : vector<1x256xf32>
    %22 = vector.broadcast %2 : f32 to vector<1x256xf32>
    %23 = arith.mulf %22, %9 : vector<1x256xf32>
    %24 = vector.broadcast %3 : f32 to vector<1x256xf32>
    %25 = arith.mulf %24, %7 : vector<1x256xf32>
    %26 = arith.addf %23, %25 : vector<1x256xf32>
    %27 = vector.broadcast %5 : f32 to vector<1x256xf32>
    %28 = arith.addf %26, %27 : vector<1x256xf32>
    %29 = arith.select %14, %21, %28 : vector<1x256xi1>, vector<1x256xf32>
    %cst = arith.constant 0.000000e+00 : f32
    %30 = vector.broadcast %cst : f32 to vector<1x256xf32>
    %31 = arith.maximumf %29, %30 : vector<1x256xf32>
    %c0_3 = arith.constant 0 : index
    %c0_4 = arith.constant 0 : index
    %32 = vector.load %arg2[%c0_3, %c0_4] : memref<256x128xf32, #tpu.memory_space<vmem>>, vector<256x128xf32>
    %cst_5 = arith.constant dense<0.000000e+00> : vector<1x128xf32>
    %33 = tpu.matmul %31, %32, %cst_5 {dimension_numbers = #tpu.dot_dimension_numbers<[1], [0], [0], [1], [0, 0, 1, 1], [], []>} : vector<1x256xf32>, vector<256x128xf32>, vector<1x128xf32> -> vector<1x128xf32>
    %34 = vector.broadcast %6 : f32 to vector<1x128xf32>
    %35 = arith.addf %33, %34 : vector<1x128xf32>
    %c0_6 = arith.constant 0 : index
    %c0_7 = arith.constant 0 : index
    %36 = vector.load %arg4[%c0_6, %c0_7] : memref<1x128xf32, #tpu.memory_space<vmem>>, vector<1x128xf32>
    tpu.vector_store %arg4[%c0_6, %c0_7], %35 {strides = array<i32>} : memref<1x128xf32, #tpu.memory_space<vmem>>, vector<1x128xf32>,
    return
  }
  func.func @transform_0(%arg0: i32) -> i32 {
    %c0_i32 = arith.constant 0 : i32
    %c0_i32_0 = arith.constant 0 : i32
    return %c0_i32 : i32
  }
  func.func @transform_1(%arg0: i32) -> (i32, i32) {
    %c0_i32 = arith.constant 0 : i32
    %c0_i32_0 = arith.constant 0 : i32
    %c0_i32_1 = arith.constant 0 : i32
    return %c0_i32, %c0_i32_0 : i32, i32
  }
  func.func @transform_2(%arg0: i32) -> (i32, i32) {
    %c0_i32 = arith.constant 0 : i32
    %c0_i32_0 = arith.constant 0 : i32
    return %arg0, %c0_i32 : i32, i32
  }
  func.func @transform_3(%arg0: i32) -> (i32, i32) {
    %c0_i32 = arith.constant 0 : i32
    %c0_i32_0 = arith.constant 0 : i32
    return %arg0, %c0_i32 : i32, i32
  }
}

</mosaic_0001>

<bundles_post_ra>
// kernel: tpu_custom_call.1
= control target key start
LH: loop header
LB: loop body
LE: loop exit
PB: predicated region body
PF: predicated region fallthrough
CT: control target
= control target key end

     0   :  { %8 = vsyncpa [#allocation5], 0  ;;  %s493_s0 = inlined_call_operand.hbm [shape: f32[9], index: 0, kind: input, shape index: {}]   ;;  %s494_s1 = inlined_call_operand.hbm [shape: f32[256,128], index: 1, kind: input, shape index: {}]   ;;  %s495_s2 = inlined_call_operand.vmem [shape: f32[1,256], index: 2, kind: input, shape index: {}]   ;;  %s496_s3 = inlined_call_operand.hbm [shape: f32[1,128], index: 3, kind: output, shape index: {}]  }
   0x1   :  { %9 = vsyncpa [#allocation3], 0 }
   0x2   :  { %10 = vsyncpa [#allocation4], 0  ;;  %s343_s14 = scalar_lea.hbm %s493_s0, 16 }
   0x3   :  { %p344_p0 = scmp.ne.s32.totalorder %s493_s0, %s343_s14  ;;  %p347_p1 = scmp.lt.u32.totalorder %s343_s14, %s493_s0 }
   0x5   :  { %p349_p2 = pnand %p347_p1, %p344_p0 }
   0x7   :  { %352 = shalt.err (!%p349_p2)
}
   0x8   :  { %s403_s19 = smov [#allocation2]   ;;  %s404_s22 = smov [#allocation6]  }
   0x9   :  { %18 = dma.hbm_to_smem %s493_s0, 16, %s403_s19, [#allocation5]  }
   0xa   :  { %s24_s23 = sshll.u32 %s404_s22, 4  ;;  %s353_s26 = scalar_lea.hbm %s494_s1, 4096  ;;  %s25_s23 = int_to_ptr.vmem [resolvable:$true] %s24_s23 }
   0xb   :  { %p354_p3 = scmp.ne.s32.totalorder %s494_s1, %s353_s26  ;;  %p357_p4 = scmp.lt.u32.totalorder %s353_s26, %s494_s1 }
   0xd   :  { %p359_p5 = pnand %p357_p4, %p354_p3 }
   0xf   :  { %362 = shalt.err (!%p359_p5)
}
  0x10   :  { %s363_s4 = scalar_lea.vmem %s25_s23, 4096  ;;  %p368_p7 = scmp.lt.s32.totalorder %s25_s23, %s25_s23 }
  0x11   :  { %p364_p6 = scmp.ne.s32.totalorder %s25_s23, %s363_s4  ;;  %p369_p8 = scmp.lt.s32.totalorder %s363_s4, %s363_s4 }
  0x13   :  { %p370_p9 = por %p369_p8, %p368_p7 }
  0x15   :  { %p371_p10 = pnand %p370_p9, %p364_p6 }
  0x17   :  { %374 = shalt.err (!%p371_p10)
}
  0x18   :  { %s405_s0 = smov 128   ;;  %s406_s5 = smov 8  }
  0x19   :  { %30 = dma.hbm_to_vmem [thread:$0]  %s494_s1, 4096, %s25_s23, [#allocation3], %s405_s0, %s405_s0, %s406_s5  }
  0x1a   :  { %397 = dma.done.wait [#allocation5], 16  }
  0x1b   :  { %398 = vsyncadd [#allocation5], 4294967280 }
  0x1c   :  { %399 = dma.done.wait [#allocation3], 4096  }
  0x1d   :  { %400 = vsyncadd [#allocation3], 4294963200 }
  0x1e   :  { %39 = sfence }
  0x1f   :  { %v49_v0 = vlaneseq  ;;  %v158_v1 = vld [vmem:[#allocation6 + $0x80] sm:$0xff]  ;;  %v458_v2 = vld [vmem:[%s495_s2] sm:$0x3]  ;;  %v159_v3 = vld [vmem:[#allocation6 + $0x88] sm:$0xff]  ;;  %s407_s1 = smov 127   ;;  %s408_s2 = smov 1  }
  0x20   :  { %v142_v4 = vld [vmem:[#allocation6] sm:$0xff]  ;;  %v143_v5 = vld [vmem:[#allocation6 + $0x8] sm:$0xff]  ;;  %v303_v7 = vpack.c.bf16 %v159_v3, %v158_v1  ;;  %v160_v9 = vld [vmem:[#allocation6 + $0x90] sm:$0xff]  ;;  %s264_s10 = sld [smem:[#allocation2 + $0x3]]  ;;  %s262_s11 = sld [smem:[#allocation2 + $0x1]] }
  0x21   :  { %v461_v6 = vshrl.u32 %v49_v0, 7  ;;  %v305_v8 = vpack.c.bf16 %v143_v5, %v142_v4  ;;  %v161_v10 = vld [vmem:[#allocation6 + $0x98] sm:$0xff]  ;;  %v144_v11 = vld [vmem:[#allocation6 + $0x10] sm:$0xff]  ;;  %v162_v14 = vld [vmem:[#allocation6 + $0xa0] sm:$0xff]  ;;  %s263_s12 = sld [smem:[#allocation2 + $0x2]]  ;;  %v64_v58 = vand.u32 127, %v49_v0 }
  0x22   :  { %v307_v12 = vpack.c.bf16 %v161_v10, %v160_v9  ;;  %v145_v13 = vld [vmem:[#allocation6 + $0x18] sm:$0xff]  ;;  %v163_v15 = vld [vmem:[#allocation6 + $0xa8] sm:$0xff]  ;;  %304 = vmatprep.subr.bf16.mxu0 %v303_v7  ;;  %v146_v21 = vld [vmem:[#allocation6 + $0x20] sm:$0xff]  ;;  %v409_v55 = vmov 1966171168   ;;  %s40_s13 = sld [smem:[#allocation2]] }
  0x23   :  { %v464_v16 = vsub.s32 0, %v461_v6  ;;  %v467_v17 = vsub.s32 1, %v461_v6  ;;  %306 = vmatpush3.bf16.msra.mxu0 %v305_v8  ;;  %v309_v18 = vpack.c.bf16 %v145_v13, %v144_v11  ;;  %v311_v20 = vpack.c.bf16 %v163_v15, %v162_v14  ;;  %v147_v22 = vld [vmem:[#allocation6 + $0x28] sm:$0xff]  ;;  %v164_v23 = vld [vmem:[#allocation6 + $0xb0] sm:$0xff]  ;;  %v165_v24 = vld [vmem:[#allocation6 + $0xb8] sm:$0xff]  ;;  %s265_s14 = sld [smem:[#allocation2 + $0x4]] }
  0x24   :  { %308 = vmatprep.subr.bf16.mxu0 %v307_v12  ;;  %v313_v26 = vpack.c.bf16 %v147_v22, %v146_v21  ;;  %v315_v27 = vpack.c.bf16 %v165_v24, %v164_v23  ;;  %v148_v28 = vld [vmem:[#allocation6 + $0x30] sm:$0xff]  ;;  %v149_v29 = vld [vmem:[#allocation6 + $0x38] sm:$0xff]  ;;  %v166_v30 = vld [vmem:[#allocation6 + $0xc0] sm:$0xff]  ;;  %v89_v56 = vunpack.c.l.s4 %v409_v55  ;;  %vm65_vm0 = vcmp.lt.s32.totalorder %v64_v58, 127  ;;  %s266_s15 = sld [smem:[#allocation2 + $0x5]]  ;;  %s267_s16 = sld [smem:[#allocation2 + $0x8]] }
  0x25   :  { %v52_v19 = vrot.slane %v458_v2, %v464_v16  ;;  %v56_v25 = vrot.slane %v458_v2, %v467_v17  ;;  %v167_v31 = vld [vmem:[#allocation6 + $0xc8] sm:$0xff]  ;;  %v317_v32 = vpack.c.bf16 %v149_v29, %v148_v28  ;;  %v150_v34 = vld [vmem:[#allocation6 + $0x40] sm:$0xff]  ;;  %v168_v36 = vld [vmem:[#allocation6 + $0xd0] sm:$0xff]  ;;  %vm72_vm1 = vcmp.lt.s32.totalorder %v64_v58, 1  ;;  %s410_s17 = smov [#allocation7]  }
  0x26   :  { %v319_v33 = vpack.c.bf16 %v167_v31, %v166_v30  ;;  %v151_v35 = vld [vmem:[#allocation6 + $0x48] sm:$0xff]  ;;  %v169_v37 = vld [vmem:[#allocation6 + $0xd8] sm:$0xff]  ;;  %v152_v40 = vld [vmem:[#allocation6 + $0x50] sm:$0xff]  ;;  %v109_v57 = vstv %s264_s10  ;;  %v90_v61 = vunpack.c.0.s8 %v89_v56  ;;  %v82_v63 = vstv %s262_s11  ;;  %s252_s18 = sshll.u32 %s410_s17, 4  ;;  %s253_s18 = int_to_ptr.vmem [resolvable:$true] %s252_s18 }
  0x27   :  { %59 = vrot.lane.b32.xlu0 %v52_v19, %s407_s1  ;;  %68 = vrot.lane.b32.xlu1 %v52_v19, %s408_s2  ;;  %v321_v38 = vpack.c.bf16 %v151_v35, %v150_v34  ;;  %v323_v39 = vpack.c.bf16 %v169_v37, %v168_v36  ;;  %v153_v41 = vld [vmem:[#allocation6 + $0x58] sm:$0xff]  ;;  %v170_v42 = vld [vmem:[#allocation6 + $0xe0] sm:$0xff]  ;;  %v171_v43 = vld [vmem:[#allocation6 + $0xe8] sm:$0xff]  ;;  %v110_v62 = vmul.f32 %v109_v57, %v458_v2  ;;  %v106_v1 = vstv %s263_s12  ;;  %s375_s19 = scalar_lea.vmem %s253_s18, 16  ;;  %s379_s20 = scalar_lea.vmem %s253_s18, 32 }
  0x28   :  { %310 = vmatpush3.bf16.msra.mxu0 %v309_v18  ;;  %v325_v44 = vpack.c.bf16 %v153_v41, %v152_v40  ;;  %v327_v45 = vpack.c.bf16 %v171_v43, %v170_v42  ;;  %v154_v46 = vld [vmem:[#allocation6 + $0x60] sm:$0xff]  ;;  %v155_v47 = vld [vmem:[#allocation6 + $0x68] sm:$0xff]  ;;  %v172_v48 = vld [vmem:[#allocation6 + $0xf0] sm:$0xff]  ;;  %v93_v3 = vsub.s32 %v90_v61, %v461_v6  ;;  %v80_v18 = vstv %s40_s13  ;;  %p376_p11 = scmp.ne.s32.totalorder %s253_s18, %s375_s19  ;;  %p380_p12 = scmp.lt.s32.totalorder %s253_s18, %s253_s18 }
  0x29   :  { %312 = vmatprep.subr.bf16.mxu0 %v311_v20  ;;  %v173_v49 = vld [vmem:[#allocation6 + $0xf8] sm:$0xff]  ;;  %v329_v50 = vpack.c.bf16 %v155_v47, %v154_v46  ;;  %v156_v52 = vld [vmem:[#allocation6 + $0x70] sm:$0xff]  ;;  %v115_v7 = vrot.slane %v110_v62, %v464_v16  ;;  %v119_v8 = vrot.slane %v110_v62, %v467_v17  ;;  %v75_v21 = vadd.s32 128, %v64_v58  ;;  %p381_p13 = scmp.lt.s32.totalorder %s379_s20, %s375_s19 }
  0x2a   :  { %v331_v51 = vpack.c.bf16 %v173_v49, %v172_v48  ;;  %v157_v53 = vld [vmem:[#allocation6 + $0x78] sm:$0xff]  ;;  %v81_v22 = vmul.f32 %v80_v18, %v458_v2  ;;  %v124_v29 = vstv %s266_s15  ;;  %v174_v40 = vstv %s267_s16 }
  0x2b   :  { %61 = vrot.lane.b32.xlu0 %v56_v25, %s407_s1  ;;  %70 = vrot.lane.b32.xlu1 %v56_v25, %s408_s2  ;;  %v333_v54 = vpack.c.bf16 %v157_v53, %v156_v52  ;;  %v77_v25 = vand.u32 1, %v75_v21  ;;  %p382_p0 = por %p381_p13, %p380_p12 }
  0x2c   :  { %314 = vmatpush3.bf16.msra.mxu0 %v313_v26  ;;  %v104_v26 = vstv %s265_s14 }
  0x2d   :  { %316 = vmatprep.subr.bf16.mxu0 %v315_v27  ;;  %v76_v27 = vand.u32 1, %v64_v58  ;;  %vm79_vm2 = vcmp.eq.s32.totalorder %v77_v25, 0  ;;  %p383_p1 = pnand %p382_p0, %p376_p11 }
  0x2f   :  { %vm78_vm3 = vcmp.eq.s32.totalorder %v76_v27, 0 }
  0x30   :  { %318 = vmatpush3.bf16.msra.mxu0 %v317_v32 }
  0x31   :  { %320 = vmatprep.subr.bf16.mxu0 %v319_v33 }
  0x34   :  { %322 = vmatpush3.bf16.msra.mxu0 %v321_v38 }
  0x35   :  { %324 = vmatprep.subr.bf16.mxu0 %v323_v39 }
  0x38   :  { %326 = vmatpush3.bf16.msra.mxu0 %v325_v44 }
  0x39   :  { %328 = vmatprep.subr.bf16.mxu0 %v327_v45 }
  0x3c   :  { %330 = vmatpush3.bf16.msra.mxu0 %v329_v50 }
  0x3d   :  { %332 = vmatprep.subr.bf16.mxu0 %v331_v51 }
  0x40   :  { %334 = vmatpush3.bf16.msra.mxu0 %v333_v54 }
  0x99   :  { %v60_v59 = vpop.permute.xlu0 %59  ;;  %v69_v60 = vpop.permute.xlu1 %68 }
  0x9d   :  { %v62_v4 = vpop.permute.xlu0 %61  ;;  %v71_v5 = vpop.permute.xlu1 %70 }
  0x9e   :  { %v66_v9 = vsel %vm65_vm0, %v60_v59, %v62_v4  ;;  %v67_v0 = vsel %vm65_vm0, %v62_v4, %v60_v59  ;;  %v73_v10 = vsel %vm72_vm1, %v69_v60, %v71_v5  ;;  %v74_v11 = vsel %vm72_vm1, %v71_v5, %v69_v60 }
  0x9f   :  { %v83_v12 = vmul.f32 %v82_v63, %v66_v9  ;;  %v84_v13 = vmul.f32 %v82_v63, %v67_v0  ;;  %v107_v14 = vmul.f32 %v106_v1, %v74_v11  ;;  %v108_v15 = vmul.f32 %v106_v1, %v73_v10 }
  0xa1   :  { %v87_v19 = vcombine.low %v83_v12, %v84_v13  ;;  %v122_v20 = vadd.f32 %v115_v7, %v107_v14  ;;  %v123_v6 = vadd.f32 %v119_v8, %v108_v15 }
  0xa3   :  { %v94_v23 = vrot.slane %v87_v19, %v93_v3  ;;  %v125_v31 = vadd.f32 %v124_v29, %v122_v20  ;;  %v126_v32 = vadd.f32 %v124_v29, %v123_v6 }
  0xa5   :  { %v101_v24 = vrot.slane %v94_v23, %v93_v3 }
  0xa7   :  { %v103_v28 = vadd.f32 %v101_v24, %v81_v22 }
  0xa9   :  { %v105_v30 = vadd.f32 %v104_v26, %v103_v28 }
  0xab   :  { %v135_v33 = vrot.slane %v105_v30, %v467_v17  ;;  %v131_v34 = vrot.slane %v105_v30, %v464_v16 }
  0xad   :  { %v139_v35 = vsel %vm79_vm2, %v135_v33, %v126_v32  ;;  %v138_v36 = vsel %vm78_vm3, %v131_v34, %v125_v31 }
  0xae   :  { %v141_v37 = vmax.f32 %v139_v35, 0.0  ;;  %v140_v2 = vmax.f32 %v138_v36, 0.0 }
  0xb0   :  { %239 = vmatprep.mubr.f32.mxu0 %v141_v37 }
  0xb1   :  { %240 = vmatmul.mubr.f32.vlgmr.msra.gmra.mrb[0].mxu0 %v140_v2 }
 0x184   :  { %v300_v38 = vpop.f32.mrb[0].mxu0 }
 0x185   :  { %v301_v39 = vpop.f32.mrb[1].mxu0 }
 0x186   :  { %v302_v41 = vadd.f32 %v301_v39, %v300_v38 }
 0x188   :  { %v242_v42 = vadd.f32 %v302_v41, %v174_v40 }
 0x18a   :  { %245 = vst [vmem:[#allocation7] sm:$0x1] %v242_v42 }
 0x18b   :  { %386 = shalt.err (!%p383_p1)
}
 0x18c   :  { %s387_s23 = scalar_lea.hbm %s496_s3, 16 }
 0x18d   :  { %p388_p2 = scmp.ne.s32.totalorder %s496_s3, %s387_s23  ;;  %p391_p3 = scmp.lt.u32.totalorder %s387_s23, %s496_s3 }
 0x18f   :  { %p393_p4 = pnand %p391_p3, %p388_p2 }
 0x191   :  { %396 = shalt.err (!%p393_p4)
}
 0x192   :  { %255 = dma.vmem_to_hbm [thread:$0]  %s253_s18, 16, %s496_s3, [#allocation4]  }
 0x193   :  { %401 = dma.done.wait [#allocation4], 16  }
 0x194   :  { %402 = vsyncadd [#allocation4], 4294967280 }
 0x195   :  { %259 = vsyncpa [#allocation3], 1 }
 0x196   :  { %260 = vsyncpa [#allocation4], 1 }
 0x197   :  { %261 = vsyncpa [#allocation5], 1 }

</bundles_post_ra>
